<compile_context>
chip_gen: v5e
topology: v5e:2x2
jax: 0.10.0
libtpu: 0.0.40
codegen_flags: <defaults>
</compile_context>

<pallas_src>
import functools

import jax
import jax.numpy as jnp
from jax.experimental import pallas as pl
from jax.experimental.pallas import tpu as pltpu


# ----------------------------- Pallas kernels -----------------------------

def _qkv_kernel(x_ref, w_ref, kv_ref, q_ref):
    """Fused K/V/Q projection (one wide MXU matmul).

    x_ref:  (TQ*B, D)   rows in (t, b) order, f32 (cast to bf16 for the MXU)
    w_ref:  (D, 3D)     pre-transposed stacked [Wk | Wv | Wq*scale], columns
                        pre-permuted to h-outer/d-inner packing
    kv_ref: (B, TQ, 2D) [K | V] slab, batch-major (attention layout)
    q_ref:  (B, TQ, D)  Q slab, batch-major
    """
    b_sz, tq, d_model = q_ref.shape
    x = x_ref[...].astype(w_ref.dtype)                        # bf16 MXU operand
    y = jnp.dot(x, w_ref[...], preferred_element_type=jnp.float32)  # (rows, 3D)
    # (t, b) rows -> (b, t) slab; stays in VMEM (no HBM transpose pass).
    y = jnp.transpose(y.reshape(tq, b_sz, 3 * d_model), (1, 0, 2))
    kv_ref[...] = y[:, :, :2 * d_model].astype(kv_ref.dtype)
    q_ref[...] = y[:, :, 2 * d_model:].astype(q_ref.dtype)


def _attn_kernel(q_ref, kv_ref, bias_ref, o_ref, m_sc, l_sc, acc_sc, *, n_heads):
    """Flash-style attention: all heads of one batch element per grid step,
    online softmax over kv tiles (innermost, "arbitrary" grid axis).

    q_ref:   (1, TQ, D)  bf16, head packing h-outer/d-inner
    kv_ref:  (1, TK, 2D) bf16, columns = [K | V]
    bias_ref:(TQ, TK)    bf16 additive mask bias (0 or -1e30)
    o_ref:   (1, TQ, D)  bf16, written in the 't (h d)' packing expected by W
    scratch: m_sc/l_sc (H, TQ, 1) f32, acc_sc (H, TQ, dph) f32
    """
    ki = pl.program_id(2)

    @pl.when(ki == 0)
    def _():
        m_sc[...] = jnp.full_like(m_sc, -jnp.inf)
        l_sc[...] = jnp.zeros_like(l_sc)
        acc_sc[...] = jnp.zeros_like(acc_sc)

    tq = q_ref.shape[1]
    tk = kv_ref.shape[1]
    d_model = q_ref.shape[2]
    dph = d_model // n_heads

    def split_heads(a, t):                                    # (t, D) -> (H, t, dph)
        return jnp.transpose(a.reshape(t, n_heads, dph), (1, 0, 2))

    q = split_heads(q_ref[0], tq)
    kv = kv_ref[0]                                            # (TK, 2D)
    k = split_heads(kv[:, :d_model], tk)
    v = split_heads(kv[:, d_model:], tk)

    # scaling is folded into Wq; bias is a finite additive mask (no NaN hazard)
    s = jnp.einsum("hid,hjd->hij", q, k,
                   preferred_element_type=jnp.float32)        # (H, TQ, TK) f32
    s = s + bias_ref[...].astype(jnp.float32)[None, :, :]

    m_prev = m_sc[...]
    m_new = jnp.maximum(m_prev, jnp.max(s, axis=-1, keepdims=True))
    alpha = jnp.exp(m_prev - m_new)
    p = jnp.exp(s - m_new)
    l_sc[...] = alpha * l_sc[...] + jnp.sum(p, axis=-1, keepdims=True)
    acc_sc[...] = alpha * acc_sc[...] + jnp.einsum(
        "hij,hjd->hid", p.astype(v.dtype), v,
        preferred_element_type=jnp.float32)
    m_sc[...] = m_new

    @pl.when(ki == pl.num_programs(2) - 1)
    def _():
        o = acc_sc[...] * pl.reciprocal(l_sc[...], approx=True)   # EUP reciprocal
        o = jnp.transpose(o, (1, 0, 2)).reshape(tq, d_model)      # 't (h d)' packing
        o_ref[0] = o.astype(o_ref.dtype)


def _post_kernel(a_ref, x_ref, wo_ref, g1_ref, b1_ref,
                 w1_ref, bf1_ref, w2_ref, bf2_ref, g2_ref, b2_ref,
                 out_ref, n1_sc, acc_sc, *, eps):
    """Output projection + residual + LN1 + FeedForward (FF-tiled) + residual + LN2.

    Grid: (row_tile i, ff_tile j) with j innermost ("arbitrary").
    a_ref:  (B, TQ, D)       bf16 attention output (batch-major)
    x_ref:  (TQ, B, D)       f32 residual input (time-major)
    w1_ref: (D, FF_TILE)     bf16;  w2_ref: (FF_TILE, D) bf16
    out_ref:(TQ, B, D)       f32 (resident across j, written at finalize)
    n1_sc / acc_sc: (TQ*B, D) f32 scratch (LN1 output / FF accumulator)
    """
    j = pl.program_id(1)
    tq, b_sz, d_model = x_ref.shape
    rows = tq * b_sz

    @pl.when(j == 0)
    def _():
        a = jnp.transpose(a_ref[...], (1, 0, 2)).reshape(rows, d_model)  # bf16
        x = x_ref[...].reshape(rows, d_model)                            # f32
        # attention output projection (no bias) + residual_1 + LayerNorm1
        x1 = jnp.dot(a, wo_ref[...], preferred_element_type=jnp.float32)
        h1 = x1 + x
        mu1 = jnp.mean(h1, axis=-1, keepdims=True)
        var1 = jnp.mean((h1 - mu1) ** 2, axis=-1, keepdims=True)
        n1_sc[...] = ((h1 - mu1) * jax.lax.rsqrt(var1 + eps)
                      * g1_ref[...] + b1_ref[...])
        acc_sc[...] = jnp.zeros_like(acc_sc)

    # FeedForward chunk: Linear -> ReLU -> (dropout = identity) -> partial Linear
    n1 = n1_sc[...]
    f = jnp.dot(n1.astype(w1_ref.dtype), w1_ref[...],
                preferred_element_type=jnp.float32) + bf1_ref[...]
    f = jnp.maximum(f, 0.0)
    acc_sc[...] += jnp.dot(f.astype(w2_ref.dtype), w2_ref[...],
                           preferred_element_type=jnp.float32)

    @pl.when(j == pl.num_programs(1) - 1)
    def _():
        # second-linear bias + residual_2 + LayerNorm2 (f32 math)
        h2 = acc_sc[...] + bf2_ref[...] + n1_sc[...]
        mu2 = jnp.mean(h2, axis=-1, keepdims=True)
        var2 = jnp.mean((h2 - mu2) ** 2, axis=-1, keepdims=True)
        y = (h2 - mu2) * jax.lax.rsqrt(var2 + eps) * g2_ref[...] + b2_ref[...]
        out_ref[...] = y.reshape(tq, b_sz, d_model).astype(out_ref.dtype)


# ------------------------------ helpers -------------------------------------

def _vmem_limit_bytes():
    """Generation-aware scoped-VMEM budget (~96 MiB v5e/v6e, ~48 MiB v7x)."""
    cap = 128 * 1024 * 1024
    try:
        cap = int(getattr(pltpu.get_tpu_info(), "vmem_capacity_bytes", cap))
    except Exception:
        pass
    return min(cap * 3 // 4, 100 * 1024 * 1024)


def _resident_spec(block_shape):
    """BlockSpec for a constant-index (weight-like) operand.

    Single-buffered (pl.Buffered(1)): the block index never changes, so no
    prefetch overlap is lost, and resident VMEM is halved vs. the default
    double-buffering."""
    n = len(block_shape)
    return pl.BlockSpec(block_shape, lambda *args: (0,) * n,
                        pipeline_mode=pl.Buffered(1))


def _pick_row_tile(T, B, max_rows=1024):
    """Time-tile TQ: TQ*B rows per grid step; TQ % 8 == 0 unless TQ == T."""
    if T * B <= max_rows:
        return T
    upper = max(1, min(T, max_rows // max(B, 1)))
    for tq in range(upper, 0, -1):
        if T % tq == 0 and tq % 8 == 0:
            return tq
    # TODO(synk): ragged last tile (pl.cdiv grid) for awkward T*B instead of
    #             falling back to a full-T tile.
    return T


def _pick_div_tile(n, cap, mult):
    """Largest divisor of n that is <= cap and a multiple of `mult`; else n."""
    if n <= cap:
        return n
    for t in range(min(cap, n), 0, -1):
        if n % t == 0 and t % mult == 0:
            return t
    return n


def prepare_decoder_params(params, n_heads, compute_dtype=jnp.bfloat16):
    """One-time weight prep (all done once, outside the pallas_calls):
      * fold the '(d h)' -> '(h d)' head permutation into the QKV output cols,
      * fold the 1/sqrt(d_per_head) softmax scaling into Wq,
      * stack K/V/Q into one (D, 3D) matrix,
      * pre-transpose every MXU weight to (in, out) layout (contract ((1,),(0,))
        in-kernel -> no per-step relayout),
      * cast MXU weights to bf16, keep LN/bias vectors in f32."""
    d_model = params["wk"].shape[0]
    dph = d_model // n_heads
    scaling = float(dph) ** (-0.5)
    # new output-feature index (h*dph + d) takes old index (d*H + h)
    perm = (jnp.arange(dph)[None, :] * n_heads
            + jnp.arange(n_heads)[:, None]).reshape(-1)
    wkvq = jnp.concatenate(
        [params["wk"][perm], params["wv"][perm],
         params["wq"][perm] * scaling], axis=0).T              # (D, 3D)
    f32 = jnp.float32
    return {
        "wkvq": wkvq.astype(compute_dtype),                    # (D, 3D)
        "wo": params["wo"].T.astype(compute_dtype),            # (D, D)
        "ff_w1": params["ff_w1"].T.astype(compute_dtype),      # (D, FF)
        "ff_w2": params["ff_w2"].T.astype(compute_dtype),      # (FF, D)
        "ff_b1": params["ff_b1"].reshape(1, -1).astype(f32),
        "ff_b2": params["ff_b2"].reshape(1, -1).astype(f32),
        "ln1_g": params["ln1_g"].reshape(1, -1).astype(f32),
        "ln1_b": params["ln1_b"].reshape(1, -1).astype(f32),
        "ln2_g": params["ln2_g"].reshape(1, -1).astype(f32),
        "ln2_b": params["ln2_b"].reshape(1, -1).astype(f32),
    }


# ------------------------------ Wrapper ------------------------------------

def decoder_layer(x, mask, prep, *, n_heads, eps=1e-5):
    """Pallas implementation of DecoderLayer.forward.  x: (T, B, D) f32."""
    T, B, D = x.shape
    dph = D // n_heads
    FF = prep["ff_w1"].shape[1]
    compute_dtype = prep["wkvq"].dtype
    vmem_limit = _vmem_limit_bytes()

    TQ = _pick_row_tile(T, B)              # row tile for QKV / post kernels
    nt = T // TQ
    TQA = _pick_div_tile(T, 256, 8)        # attention q tile
    TKA = _pick_div_tile(T, 512, 128)      # attention kv tile
    nq, nk = T // TQA, T // TKA
    FFT = _pick_div_tile(FF, 1024, 128)    # FF tile
    nf = FF // FFT

    x2d = x.reshape(T * B, D)                                  # rows in (t, b) order

    # --- fused K/V/Q projection: one wide matmul, weight VMEM-resident ------
    kv, q = pl.pallas_call(
        _qkv_kernel,
        grid=(nt,),
        in_specs=[
            pl.BlockSpec((TQ * B, D), lambda i: (i, 0)),       # activations, pipelined
            _resident_spec((D, 3 * D)),                        # stacked weight
        ],
        out_specs=(
            pl.BlockSpec((B, TQ, 2 * D), lambda i: (0, i, 0)),
            pl.BlockSpec((B, TQ, D), lambda i: (0, i, 0)),
        ),
        out_shape=(
            jax.ShapeDtypeStruct((B, T, 2 * D), compute_dtype),
            jax.ShapeDtypeStruct((B, T, D), compute_dtype),
        ),
        compiler_params=pltpu.CompilerParams(
            dimension_semantics=("parallel",),
            vmem_limit_bytes=vmem_limit),
    )(x2d, prep["wkvq"])

    # additive mask bias: 0 where visible, -1e30 where masked (finite -> no NaN);
    # stored bf16 (half the VMEM / HBM traffic), upcast to f32 inside the kernel.
    bias = jnp.where(mask, -1e30, 0.0).astype(jnp.bfloat16)    # (T, T)

    # --- flash-tiled attention: grid (batch, q tiles, kv tiles) -------------
    attn = pl.pallas_call(
        functools.partial(_attn_kernel, n_heads=n_heads),
        grid=(B, nq, nk),
        in_specs=[
            pl.BlockSpec((1, TQA, D), lambda b, qi, ki: (b, qi, 0)),
            pl.BlockSpec((1, TKA, 2 * D), lambda b, qi, ki: (b, ki, 0)),
            pl.BlockSpec((TQA, TKA), lambda b, qi, ki: (qi, ki)),
        ],
        out_specs=pl.BlockSpec((1, TQA, D), lambda b, qi, ki: (b, qi, 0)),
        out_shape=jax.ShapeDtypeStruct((B, T, D), compute_dtype),
        scratch_shapes=[
            pltpu.VMEM((n_heads, TQA, 1), jnp.float32),        # running max
            pltpu.VMEM((n_heads, TQA, 1), jnp.float32),        # running denom
            pltpu.VMEM((n_heads, TQA, dph), jnp.float32),      # output accumulator
        ],
        compiler_params=pltpu.CompilerParams(
            dimension_semantics=("parallel", "parallel", "arbitrary"),
            vmem_limit_bytes=vmem_limit),
    )(q, kv, bias)

    # --- output proj + residual + LN1 + FF (FF-tiled) + residual + LN2 ------
    out = pl.pallas_call(
        functools.partial(_post_kernel, eps=eps),
        grid=(nt, nf),
        in_specs=[
            pl.BlockSpec((B, TQ, D), lambda i, j: (0, i, 0)),  # attention output
            pl.BlockSpec((TQ, B, D), lambda i, j: (i, 0, 0)),  # residual input
            _resident_spec((D, D)),                            # wo
            _resident_spec((1, D)),                            # ln1_g
            _resident_spec((1, D)),                            # ln1_b
            pl.BlockSpec((D, FFT), lambda i, j: (0, j)),       # ff_w1 chunk
            pl.BlockSpec((1, FFT), lambda i, j: (0, j)),       # ff_b1 chunk
            pl.BlockSpec((FFT, D), lambda i, j: (j, 0)),       # ff_w2 chunk
            _resident_spec((1, D)),                            # ff_b2
            _resident_spec((1, D)),                            # ln2_g
            _resident_spec((1, D)),                            # ln2_b
        ],
        out_specs=pl.BlockSpec((TQ, B, D), lambda i, j: (i, 0, 0)),
        out_shape=jax.ShapeDtypeStruct((T, B, D), jnp.float32),
        scratch_shapes=[
            pltpu.VMEM((TQ * B, D), jnp.float32),              # n1 (LN1 output)
            pltpu.VMEM((TQ * B, D), jnp.float32),              # FF accumulator
        ],
        compiler_params=pltpu.CompilerParams(
            dimension_semantics=("parallel", "arbitrary"),
            vmem_limit_bytes=vmem_limit),
    )(attn, x, prep["wo"], prep["ln1_g"], prep["ln1_b"],
      prep["ff_w1"], prep["ff_b1"], prep["ff_w2"], prep["ff_b2"],
      prep["ln2_g"], prep["ln2_b"])
    return out


# ------------------------- pure-JAX reference -------------------------------

def decoder_layer_ref(x, mask, params, *, n_heads, eps=1e-5):
    T, B, D = x.shape
    dph = D // n_heads
    scaling = float(dph) ** (-0.5)

    def lin(y, w, b=None):
        out = y @ w.T
        return out if b is None else out + b

    k = lin(x, params["wk"])
    v = lin(x, params["wv"])
    q = lin(x, params["wq"])

    def split(y):  # 't b (d h) -> b h t d'
        return jnp.transpose(y.reshape(T, B, dph, n_heads), (1, 3, 0, 2))

    q, k, v = split(q), split(k), split(v)
    s = jnp.einsum("bhid,bhjd->bhij", q, k) * scaling
    s = jnp.where(mask[None, None], -jnp.inf, s)
    att = jax.nn.softmax(s, axis=-1)
    o = jnp.einsum("bhij,bhjd->bhid", att, v)
    o = jnp.transpose(o, (2, 0, 1, 3)).reshape(T, B, D)   # 'b h t d -> t b (h d)'
    x1 = lin(o, params["wo"])

    def layernorm(y, g, b):
        mu = jnp.mean(y, -1, keepdims=True)
        var = jnp.mean((y - mu) ** 2, -1, keepdims=True)
        return (y - mu) * jax.lax.rsqrt(var + eps) * g + b

    n1 = layernorm(x1 + x, params["ln1_g"], params["ln1_b"])
    f = jnp.maximum(lin(n1, params["ff_w1"], params["ff_b1"]), 0.0)
    f2 = lin(f, params["ff_w2"], params["ff_b2"])
    return layernorm(f2 + n1, params["ln2_g"], params["ln2_b"])


# ------------------------------- main ---------------------------------------

def init_params(key, d_model, ff_size):
    ks = jax.random.split(key, 8)
    s = 0.1
    return {
        "wk": s * jax.random.normal(ks[0], (d_model, d_model), jnp.float32),
        "wv": s * jax.random.normal(ks[1], (d_model, d_model), jnp.float32),
        "wq": s * jax.random.normal(ks[2], (d_model, d_model), jnp.float32),
        "wo": s * jax.random.normal(ks[3], (d_model, d_model), jnp.float32),
        "ln1_g": jnp.ones((d_model,), jnp.float32),
        "ln1_b": jnp.zeros((d_model,), jnp.float32),
        "ff_w1": s * jax.random.normal(ks[4], (ff_size, d_model), jnp.float32),
        "ff_b1": s * jax.random.normal(ks[5], (ff_size,), jnp.float32),
        "ff_w2": s * jax.random.normal(ks[6], (d_model, ff_size), jnp.float32),
        "ff_b2": s * jax.random.normal(ks[7], (d_model,), jnp.float32),
        "ln2_g": jnp.ones((d_model,), jnp.float32),
        "ln2_b": jnp.zeros((d_model,), jnp.float32),
    }


if __name__ == "__main__":
    T, B, D, H, FF = 8, 2, 32, 4, 64
    key = jax.random.PRNGKey(0)
    kx, kp = jax.random.split(key)

    x = jax.random.normal(kx, (T, B, D), jnp.float32)
    # causal mask: True (masked) for future positions, broadcast over (b, h)
    mask = jnp.triu(jnp.ones((T, T), dtype=jnp.bool_), k=1)
    params = init_params(kp, D, FF)
    prep = prepare_decoder_params(params, n_heads=H)   # one-time weight prep

    out = decoder_layer(x, mask, prep, n_heads=H)
    out = jax.block_until_ready(out)

    ref = decoder_layer_ref(x, mask, params, n_heads=H)
    assert out.shape == (T, B, D)
    max_err = float(jnp.max(jnp.abs(out - ref)))
    # bf16 MXU operands with f32 accumulation -> compare loosely vs f32 reference
    assert jnp.allclose(out, ref, atol=5e-2, rtol=5e-2), \
        f"mismatch vs reference (max abs err {max_err})"
    print("KERNEL_OK")
</pallas_src>

<mosaic_0001>
module attributes {stable_mosaic.version = 11 : i64} {
  func.func @_qkv_kernel(%arg0: i32, %arg1: memref<16x32xf32, #tpu.memory_space<vmem>>, %arg2: memref<32x96xbf16, #tpu.memory_space<vmem>>, %arg3: memref<2x8x64xbf16, #tpu.memory_space<vmem>>, %arg4: memref<2x8x32xbf16, #tpu.memory_space<vmem>>) attributes {dimension_semantics = [#tpu.dimension_semantics<parallel>], iteration_bounds = array<i64: 1>, scalar_prefetch = 0 : i64, scratch_operands = 0 : i64, tpu.core_type = #tpu.core_type<tc>, window_params = [{transform_indices = @transform_0, window_bounds = array<i64: 16, 32>}, {pipeline_mode = #tpu.pipeline_mode<synchronous>, transform_indices = @transform_1, window_bounds = array<i64: 32, 96>}, {transform_indices = @transform_2, window_bounds = array<i64: 2, 8, 64>}, {transform_indices = @transform_3, window_bounds = array<i64: 2, 8, 32>}]} {
    %c0 = arith.constant 0 : index
    %c0_0 = arith.constant 0 : index
    %0 = vector.load %arg1[%c0, %c0_0] : memref<16x32xf32, #tpu.memory_space<vmem>>, vector<16x32xf32>
    %1 = arith.truncf %0 : vector<16x32xf32> to vector<16x32xbf16>
    %c0_1 = arith.constant 0 : index
    %c0_2 = arith.constant 0 : index
    %2 = vector.load %arg2[%c0_1, %c0_2] : memref<32x96xbf16, #tpu.memory_space<vmem>>, vector<32x96xbf16>
    %cst = arith.constant dense<0.000000e+00> : vector<16x96xf32>
    %3 = tpu.matmul %1, %2, %cst {dimension_numbers = #tpu.dot_dimension_numbers<[1], [0], [0], [1], [0, 0, 1, 1], [], []>} : vector<16x32xbf16>, vector<32x96xbf16>, vector<16x96xf32> -> vector<16x96xf32>
    %4 = vector.shape_cast %3 : vector<16x96xf32> to vector<8x2x96xf32>
    %5 = tpu.transpose %4, [1, 0, 2] : vector<8x2x96xf32> -> vector<2x8x96xf32>
    %6 = vector.extract_strided_slice %5 {offsets = [0, 0, 0], sizes = [2, 8, 64], strides = [1, 1, 1]} : vector<2x8x96xf32> to vector<2x8x64xf32>
    %7 = arith.truncf %6 : vector<2x8x64xf32> to vector<2x8x64xbf16>
    %c0_3 = arith.constant 0 : index
    %c0_4 = arith.constant 0 : index
    %c0_5 = arith.constant 0 : index
    %8 = vector.load %arg3[%c0_3, %c0_4, %c0_5] : memref<2x8x64xbf16, #tpu.memory_space<vmem>>, vector<2x8x64xbf16>
    tpu.vector_store %arg3[%c0_3, %c0_4, %c0_5], %7 {strides = array<i32>} : memref<2x8x64xbf16, #tpu.memory_space<vmem>>, vector<2x8x64xbf16>,
    %9 = vector.extract_strided_slice %5 {offsets = [0, 0, 64], sizes = [2, 8, 32], strides = [1, 1, 1]} : vector<2x8x96xf32> to vector<2x8x32xf32>
    %10 = arith.truncf %9 : vector<2x8x32xf32> to vector<2x8x32xbf16>
    %c0_6 = arith.constant 0 : index
    %c0_7 = arith.constant 0 : index
    %c0_8 = arith.constant 0 : index
    %11 = vector.load %arg4[%c0_6, %c0_7, %c0_8] : memref<2x8x32xbf16, #tpu.memory_space<vmem>>, vector<2x8x32xbf16>
    tpu.vector_store %arg4[%c0_6, %c0_7, %c0_8], %10 {strides = array<i32>} : memref<2x8x32xbf16, #tpu.memory_space<vmem>>, vector<2x8x32xbf16>,
    return
  }
  func.func @transform_0(%arg0: i32) -> (i32, i32) {
    %c0_i32 = arith.constant 0 : i32
    %c0_i32_0 = arith.constant 0 : i32
    return %arg0, %c0_i32 : i32, i32
  }
  func.func @transform_1(%arg0: i32) -> (i32, i32) {
    %c0_i32 = arith.constant 0 : i32
    %c0_i32_0 = arith.constant 0 : i32
    %c0_i32_1 = arith.constant 0 : i32
    return %c0_i32, %c0_i32_0 : i32, i32
  }
  func.func @transform_2(%arg0: i32) -> (i32, i32, i32) {
    %c0_i32 = arith.constant 0 : i32
    %c0_i32_0 = arith.constant 0 : i32
    %c0_i32_1 = arith.constant 0 : i32
    return %c0_i32, %arg0, %c0_i32_0 : i32, i32, i32
  }
  func.func @transform_3(%arg0: i32) -> (i32, i32, i32) {
    %c0_i32 = arith.constant 0 : i32
    %c0_i32_0 = arith.constant 0 : i32
    %c0_i32_1 = arith.constant 0 : i32
    return %c0_i32, %arg0, %c0_i32_0 : i32, i32, i32
  }
}

</mosaic_0001>

<bundles_post_ra>
// kernel: tpu_custom_call.1
= control target key start
LH: loop header
LB: loop body
LE: loop exit
PB: predicated region body
PF: predicated region fallthrough
CT: control target
= control target key end

     0   :  { %9 = vsyncpa [#allocation3], 0  ;;  %s422_s0 = inlined_call_operand.hbm [shape: f32[16,32], index: 0, kind: input, shape index: {}]   ;;  %s423_s1 = inlined_call_operand.hbm [shape: bf16[32,96], index: 1, kind: input, shape index: {}]   ;;  %s424_s2 = inlined_call_operand.hbm [shape: bf16[2,8,64], index: 2, kind: output, shape index: {0}]   ;;  %s425_s3 = inlined_call_operand.hbm [shape: bf16[2,8,32], index: 3, kind: output, shape index: {1}]  }
   0x1   :  { %10 = vsyncpa [#allocation6], 0 }
   0x2   :  { %11 = vsyncpa [#allocation4], 0 }
   0x3   :  { %12 = vsyncpa [#allocation9], 0  ;;  %s17_s14 = sshll.u32 %s422_s0, 4  ;;  %s362_s15 = smov [#allocation2]   ;;  %s18_s14 = int_to_ptr.hbm [resolvable:$true] %s17_s14 }
   0x4   :  { %s19_s16 = sshll.u32 %s362_s15, 4  ;;  %s30_s19 = sshll.u32 %s423_s1, 4  ;;  %s20_s16 = int_to_ptr.vmem [resolvable:$true] %s19_s16  ;;  %s31_s19 = int_to_ptr.hbm [resolvable:$true] %s30_s19 }
   0x5   :  { %s363_s20 = smov 128   ;;  %s364_s21 = smov 8  }
   0x6   :  { %25 = dma.hbm_to_vmem [thread:$0]  %s18_s14, 256, %s20_s16, [#allocation3], %s363_s20, %s363_s20, %s364_s21  }
   0x7   :  { %s365_s22 = smov [#allocation5]   ;;  %s366_s24 = smov 64  }
   0x8   :  { %s32_s23 = sshll.u32 %s365_s22, 4  ;;  %s367_s25 = smov 4   ;;  %s33_s23 = int_to_ptr.vmem [resolvable:$true] %s32_s23 }
   0x9   :  { %38 = dma.hbm_to_vmem [thread:$0]  %s31_s19, 256, %s33_s23, [#allocation6], %s366_s24, %s366_s24, %s367_s25  }
   0xa   :  { %354 = dma.done.wait [#allocation3], 256  }
   0xb   :  { %355 = vsyncadd [#allocation3], 4294967040 }
   0xc   :  { %356 = dma.done.wait [#allocation6], 256  }
   0xd   :  { %357 = vsyncadd [#allocation6], 4294967040  ;;  %v248_v0 = vld [vmem:[#allocation5 + $0x8] sm:$0xff]  ;;  %v247_v1 = vld [vmem:[#allocation5] sm:$0xff]  ;;  %vm67_vm0 = vcmask 261120   ;;  %vm100_vm1 = vcmask 1047556  }
   0xe   :  { %77 = vmatpush.bf16.msra.mxu0 %v248_v0  ;;  %v48_v2 = vld [vmem:[#allocation2] sm:$0xff]  ;;  %v49_v3 = vld [vmem:[#allocation2 + $0x8] sm:$0xff]  ;;  %v368_v5 = vmov 1934713408   ;;  %vm161_vm2 = vcmask 519168   ;;  %s202_s26 = sshll.u32 %s424_s2, 4  ;;  %s203_s26 = int_to_ptr.hbm [resolvable:$true] %s202_s26 }
   0xf   :  { %v50_v4 = vpack.c.bf16 %v49_v3, %v48_v2  ;;  %v103_v6 = vunpack.c.l.s4 %v368_v5  ;;  %s369_s27 = smov [#allocation7]   ;;  %vm193_vm3 = vcmask 257024   ;;  %s370_s2 = smov [#allocation8]  }
  0x10   :  { %s200_s28 = sshll.u32 %s369_s27, 4  ;;  %s213_s29 = sshll.u32 %s370_s2, 4  ;;  %s201_s28 = int_to_ptr.vmem [resolvable:$true] %s200_s28  ;;  %s214_s29 = int_to_ptr.vmem [resolvable:$true] %s213_s29 }
  0x11   :  { %v104_v8 = vunpack.c.0.s8 %v103_v6  ;;  %s215_s5 = sshll.u32 %s425_s3, 4  ;;  %s216_s5 = int_to_ptr.hbm [resolvable:$true] %s215_s5 }
  0x12   :  { %78 = vmatpush.bf16.msra.mxu0 %v247_v1 }
  0x15   :  { %242 = vmatmul.msk.bf16.vlgmr.msra.gmra.mxu0 %vm67_vm0, %v50_v4 }
  0x92   :  { %v80_v7 = vpop.f32.mrf.mxu0 }
  0x93   :  { %v88_v9 = vrot.slane %v80_v7, 4  ;;  %v243_v10 = vrot.slane %v80_v7, 6  ;;  %v244_v11 = vrot.slane %v80_v7, 10 }
  0x95   :  { %v101_v12 = vsel %vm100_vm1, %v243_v10, %v80_v7  ;;  %v109_v13 = vsel %vm100_vm1, %v244_v11, %v88_v9 }
  0x96   :  { %v105_v14 = vperm.slane %v101_v12, %v104_v8  ;;  %v113_v15 = vperm.slane %v109_v13, %v104_v8 }
  0x98   :  { %v106_v16 = vrot.slane %v105_v14, 4  ;;  %v114_v17 = vrot.slane %v113_v15, 4  ;;  %140 = vst [vmem:[#allocation1] ss:$4 sm:$0xff] %v105_v14 }
  0x99   :  { %142 = vst [vmem:[#allocation1 + $0x1] ss:$4 sm:$0xff] %v113_v15 }
  0x9a   :  { %v107_v18 = vsel %vm100_vm1, 0.0, %v106_v16  ;;  %v115_v19 = vsel %vm100_vm1, 0.0, %v114_v17  ;;  %v82_v20 = vpop.f32.mrf.mxu0 }
  0x9b   :  { %149 = vst [vmem:[#allocation1 + $0x20] ss:$4 sm:$0xff] %v107_v18  ;;  %v91_v21 = vrot.slane %v82_v20, 4  ;;  %v245_v22 = vrot.slane %v82_v20, 6  ;;  %v246_v23 = vrot.slane %v82_v20, 10 }
  0x9c   :  { %151 = vst [vmem:[#allocation1 + $0x21] ss:$4 sm:$0xff] %v115_v19 }
  0x9d   :  { %v117_v24 = vsel %vm100_vm1, %v245_v22, %v82_v20  ;;  %v125_v25 = vsel %vm100_vm1, %v246_v23, %v91_v21 }
  0x9e   :  { %v121_v26 = vperm.slane %v117_v24, %v104_v8  ;;  %v129_v27 = vperm.slane %v125_v25, %v104_v8 }
  0xa0   :  { %v122_v28 = vrot.slane %v121_v26, 4  ;;  %v130_v29 = vrot.slane %v129_v27, 4  ;;  %144 = vst [vmem:[#allocation1 + $0x2] ss:$4 sm:$0xff] %v121_v26 }
  0xa1   :  { %146 = vst [vmem:[#allocation1 + $0x3] ss:$4 sm:$0xff] %v129_v27 }
  0xa2   :  { %v123_v30 = vsel %vm100_vm1, 0.0, %v122_v28  ;;  %v131_v31 = vsel %vm100_vm1, 0.0, %v130_v29 }
  0xa3   :  { %153 = vst [vmem:[#allocation1 + $0x22] ss:$4 sm:$0xff] %v123_v30 }
  0xa4   :  { %155 = vst [vmem:[#allocation1 + $0x23] ss:$4 sm:$0xff] %v131_v31 }
  0xa8   :  { %v147_v32 = vld.sshfl [vmem:[#allocation1] sm:$0xff pattern:$0x73625140] }
  0xa9   :  { %164 = vst [vmem:[#allocation1] ss:$4 sm:$0xff] %v105_v14  ;;  %v159_v34 = vpack.c.bf16 %v147_v32, %v147_v32 }
  0xaa   :  { %166 = vst [vmem:[#allocation1 + $0x1] ss:$4 sm:$0xff] %v113_v15 }
  0xab   :  { %v156_v33 = vld.sshfl [vmem:[#allocation1 + $0x20] sm:$0xff pattern:$0x73625140]  ;;  %168 = vst [vmem:[#allocation1 + $0x2] ss:$4 sm:$0xff] %v121_v26 }
  0xac   :  { %170 = vst [vmem:[#allocation1 + $0x3] ss:$4 sm:$0xff] %v129_v27  ;;  %v160_v35 = vpack.c.bf16 %v156_v33, %v156_v33 }
  0xad   :  { %173 = vst [vmem:[#allocation1 + $0x20] ss:$4 sm:$0xff] %v107_v18 }
  0xae   :  { %175 = vst [vmem:[#allocation1 + $0x21] ss:$4 sm:$0xff] %v115_v19 }
  0xaf   :  { %177 = vst [vmem:[#allocation1 + $0x22] ss:$4 sm:$0xff] %v123_v30 }
  0xb0   :  { %179 = vst [vmem:[#allocation1 + $0x23] ss:$4 sm:$0xff] %v131_v31 }
  0xb1   :  { %162 = vst.msk [vmem:[#allocation7] sm:$0xf] %vm161_vm2, %v159_v34 }
  0xb2   :  { %163 = vst.msk [vmem:[#allocation7 + $0x4] sm:$0xf] %vm161_vm2, %v160_v35 }
  0xb3   :  { %v171_v36 = vld.sshfl [vmem:[#allocation1] sm:$0xff pattern:$0x73625140]  ;;  %208 = dma.vmem_to_hbm [thread:$0]  %s201_s28, 128, %s203_s26, [#allocation4], %s366_s24, %s366_s24, %s367_s25  }
  0xb4   :  { %v183_v37 = vpack.c.bf16 %v171_v36, %v171_v36 }
  0xb6   :  { %187 = vrot.lane.b32.xlu0 %v183_v37, %s366_s24 }
  0xb7   :  { %v180_v38 = vld.sshfl [vmem:[#allocation1 + $0x20] sm:$0xff pattern:$0x73625140] }
  0xb8   :  { %v184_v39 = vpack.c.bf16 %v180_v38, %v180_v38 }
  0xbe   :  { %189 = vrot.lane.b32.xlu0 %v184_v39, %s366_s24 }
 0x128   :  { %v188_v40 = vpop.permute.xlu0 %187 }
 0x129   :  { %194 = vst.msk [vmem:[#allocation8] sm:$0xf] %vm193_vm3, %v188_v40 }
 0x130   :  { %v190_v41 = vpop.permute.xlu0 %189 }
 0x131   :  { %195 = vst.msk [vmem:[#allocation8 + $0x4] sm:$0xf] %vm193_vm3, %v190_v41 }
 0x132   :  { %221 = dma.vmem_to_hbm [thread:$0]  %s214_s29, 128, %s216_s5, [#allocation9], %s366_s24, %s366_s24, %s367_s25  }
 0x133   :  { %358 = dma.done.wait [#allocation4], 128  }
 0x134   :  { %359 = vsyncadd [#allocation4], 4294967168 }
 0x135   :  { %360 = dma.done.wait [#allocation9], 128  }
 0x136   :  { %361 = vsyncadd [#allocation9], 4294967168 }
 0x137   :  { %230 = vsyncpa [#allocation3], 1 }
 0x138   :  { %231 = vsyncpa [#allocation6], 1 }
 0x139   :  { %232 = vsyncpa [#allocation4], 1 }
 0x13a   :  { %233 = vsyncpa [#allocation9], 1 }

</bundles_post_ra>
